<compile_context>
chip_gen: v5e
topology: v5e:2x2
jax: 0.10.0
libtpu: 0.0.40
codegen_flags: <defaults>
</compile_context>

<pallas_src>
import jax
import jax.numpy as jnp
from jax.experimental import pallas as pl
from jax.experimental.pallas import tpu as pltpu

_HIDDEN = 128


def _critic_kernel(x_ref, wf_ref, b1_ref, w2h_ref, b2_ref,
                   wm_ref, ws_ref, bh_ref, out_ref):
    # Fused fc1 + action-projection: one 256-wide matmul (single N tile on
    # v6e/v7x's 256-wide MXU).  Accumulate in f32 regardless of operand dtype.
    fused = jnp.dot(x_ref[...], wf_ref[...],
                    preferred_element_type=jnp.float32)          # (bb, 256) f32
    h1 = jnp.maximum(fused[:, :_HIDDEN] + b1_ref[...], 0.0)      # (bb, 128) f32
    a_proj = fused[:, _HIDDEN:]                                  # (bb, 128) f32

    # fc2 on concat([h1, action]) == h1 @ w2h + action @ w2a; the action term
    # already came out of the fused matmul above.
    h2 = (jnp.dot(h1.astype(w2h_ref.dtype), w2h_ref[...],
                  preferred_element_type=jnp.float32)
          + a_proj + b2_ref[...])
    h2 = jnp.maximum(h2, 0.0)                                    # (bb, 128) f32

    # Heads on VPU (multiply) + XLU (lane reduce) + EUP (exp): essentially free
    # while the MXU is the binding unit.  exp only touches the std column, so
    # no jnp.where / spurious exp(mean) branch.
    bh = bh_ref[...]                                             # (1, 2) f32
    mean = jnp.sum(h2 * wm_ref[...], axis=-1, keepdims=True) + bh[:, 0:1]
    std = jnp.exp(jnp.sum(h2 * ws_ref[...], axis=-1, keepdims=True)
                  + bh[:, 1:2])
    out_ref[:, 0:1] = mean
    out_ref[:, 1:2] = std


def _round_up(x, m):
    return ((x + m - 1) // m) * m


def critic_forward(state, action, params, *, block_b=4096, use_bf16=True):
    """Returns (mean, std) of the Normal distribution produced by Critic."""
    B, state_size = state.shape
    action_size = action.shape[1]
    in_dim = state_size + action_size
    assert params["w_fused"].shape == (in_dim, 2 * _HIDDEN)

    # Batch tile: multiple of 16 (covers bf16 sublane packing), large by
    # default (per-step pipeline overhead dominates small tiles), but capped at
    # ceil(B/2) so the "parallel" batch grid has >=2 steps whenever B allows —
    # lets v7x shard the axis across its two TensorCores.  VMEM/step at
    # bb=4096 is only a few MiB, well under every generation's scoped limit.
    bb = min(_round_up(block_b, 16), _round_up((B + 1) // 2, 16))
    bb = max(bb, 16)
    Bp = _round_up(B, bb)

    x = jnp.concatenate([state, action], axis=-1)
    if Bp != B:
        x = jnp.pad(x, ((0, Bp - B), (0, 0)))

    # bf16 MXU operands (f32 accumulation) on request; bias/ReLU/exp and the
    # VPU head weights stay f32 (v5e's VPU/EUP have no bf16 path).
    mm_dtype = jnp.bfloat16 if use_bf16 else jnp.float32
    x = x.astype(mm_dtype)
    weights = (params["w_fused"].astype(mm_dtype), params["b1"],
               params["w2h"].astype(mm_dtype), params["b2"],
               params["wm_row"], params["ws_row"], params["bh"])

    def resident(a):
        # Full-array block with a constant index_map: loaded once and kept
        # VMEM-resident across every batch-grid step.
        return pl.BlockSpec(a.shape, lambda i: (0, 0))

    itemsize = 2 if use_bf16 else 4
    cost = pl.CostEstimate(
        flops=2 * Bp * (in_dim * 2 * _HIDDEN + _HIDDEN * _HIDDEN + 2 * _HIDDEN),
        transcendentals=Bp,
        bytes_accessed=Bp * in_dim * itemsize + Bp * 2 * 4
        + sum(int(w.size) * int(w.dtype.itemsize) for w in weights))

    out = pl.pallas_call(
        _critic_kernel,
        grid=(Bp // bb,),
        out_shape=jax.ShapeDtypeStruct((Bp, 2), jnp.float32),
        in_specs=[pl.BlockSpec((bb, in_dim), lambda i: (i, 0))]
                 + [resident(w) for w in weights],
        out_specs=pl.BlockSpec((bb, 2), lambda i: (i, 0)),
        compiler_params=pltpu.CompilerParams(
            dimension_semantics=("parallel",)),
        cost_estimate=cost,
    )(x, *weights)

    # Wrapper-side slice (layout plumbing): col 0 = mean, col 1 = std.
    return out[:B, 0:1], out[:B, 1:2]


def init_critic_params(key, state_size, action_size, hidden=_HIDDEN):
    """Deterministic init mimicking nn.Linear default (U[-1/sqrt(fan_in), ..])."""
    ks = jax.random.split(key, 8)

    def lin(kw, kb, fan_in, fan_out):
        bound = 1.0 / jnp.sqrt(jnp.float32(fan_in))
        w = jax.random.uniform(kw, (fan_in, fan_out), jnp.float32, -bound, bound)
        b = jax.random.uniform(kb, (1, fan_out), jnp.float32, -bound, bound)
        return w, b

    w1, b1 = lin(ks[0], ks[1], state_size, hidden)
    w2, b2 = lin(ks[2], ks[3], hidden + action_size, hidden)
    wm, bm = lin(ks[4], ks[5], hidden, 1)
    ws, bs = lin(ks[6], ks[7], hidden, 1)

    # Block-diagonal fusion of fc1 with the action half of fc2:
    #   [state|action] @ w_fused == [state @ w1 | action @ w2a]
    w2h, w2a = w2[:hidden, :], w2[hidden:, :]
    w_fused = jnp.zeros((state_size + action_size, 2 * hidden), jnp.float32)
    w_fused = w_fused.at[:state_size, :hidden].set(w1)
    w_fused = w_fused.at[state_size:, hidden:].set(w2a)

    return {
        "w_fused": w_fused, "b1": b1,
        "w2h": w2h, "b2": b2,
        # mean/std head weights as (1, hidden) rows for the VPU/XLU head path,
        # plus the fused (1, 2) head bias.
        "wm_row": wm.T, "ws_row": ws.T,
        "bh": jnp.concatenate([bm, bs], axis=1),
    }


def _reference(state, action, p):
    s = state.shape[1]
    w1 = p["w_fused"][:s, :_HIDDEN]
    w2a = p["w_fused"][s:, _HIDDEN:]
    h1 = jnp.maximum(state @ w1 + p["b1"], 0.0)
    h2 = jnp.maximum(h1 @ p["w2h"] + action @ w2a + p["b2"], 0.0)
    mean = h2 @ p["wm_row"].T + p["bh"][:, 0:1]
    std = jnp.exp(h2 @ p["ws_row"].T + p["bh"][:, 1:2])
    return mean, std


if __name__ == "__main__":
    key = jax.random.PRNGKey(0)
    k_s, k_a, k_p, k_s2, k_a2 = jax.random.split(key, 5)

    batch, state_size, action_size = 8, 16, 4
    state = jax.random.normal(k_s, (batch, state_size), jnp.float32)
    action = jax.random.normal(k_a, (batch, action_size), jnp.float32)
    params = init_critic_params(k_p, state_size, action_size)
    ref_mean, ref_std = _reference(state, action, params)

    # 1) exact-math check: f32 MXU operands, tight tolerance.
    mean, std = jax.block_until_ready(
        critic_forward(state, action, params, use_bf16=False))
    assert mean.shape == (batch, 1) and std.shape == (batch, 1)
    assert jnp.allclose(mean, ref_mean, atol=1e-5, rtol=1e-5)
    assert jnp.allclose(std, ref_std, atol=1e-5, rtol=1e-5)

    # 2) fast path: bf16 MXU operands (f32 accumulation / elementwise).
    mean_bf, std_bf = jax.block_until_ready(
        critic_forward(state, action, params))     # use_bf16=True (default)
    assert jnp.allclose(mean_bf, ref_mean, atol=2e-2, rtol=2e-2)
    assert jnp.allclose(std_bf, ref_std, atol=2e-2, rtol=2e-2)

    # 3) non-divisible batch exercising padding + a multi-step "parallel" grid
    #    (block_b=128 -> bb=128, grid=(3,)).
    B2 = 300
    state2 = jax.random.normal(k_s2, (B2, state_size), jnp.float32)
    action2 = jax.random.normal(k_a2, (B2, action_size), jnp.float32)
    ref_mean2, ref_std2 = _reference(state2, action2, params)
    mean2, std2 = jax.block_until_ready(
        critic_forward(state2, action2, params, block_b=128))
    assert mean2.shape == (B2, 1) and std2.shape == (B2, 1)
    assert jnp.allclose(mean2, ref_mean2, atol=2e-2, rtol=2e-2)
    assert jnp.allclose(std2, ref_std2, atol=2e-2, rtol=2e-2)

    # TODO(synk): Normal.sample stays in plain JAX (mean + std * jax.random.normal);
    # only the forward pass producing (loc, scale) is implemented as a kernel.
    print("KERNEL_OK")
</pallas_src>

<mosaic_0001>
module attributes {stable_mosaic.version = 11 : i64} {
  func.func @_critic_kernel(%arg0: i32, %arg1: memref<16x20xf32, #tpu.memory_space<vmem>>, %arg2: memref<20x256xf32, #tpu.memory_space<vmem>>, %arg3: memref<1x128xf32, #tpu.memory_space<vmem>>, %arg4: memref<128x128xf32, #tpu.memory_space<vmem>>, %arg5: memref<1x128xf32, #tpu.memory_space<vmem>>, %arg6: memref<1x128xf32, #tpu.memory_space<vmem>>, %arg7: memref<1x128xf32, #tpu.memory_space<vmem>>, %arg8: memref<1x2xf32, #tpu.memory_space<vmem>>, %arg9: memref<16x2xf32, #tpu.memory_space<vmem>>) attributes {dimension_semantics = [#tpu.dimension_semantics<parallel>], iteration_bounds = array<i64: 1>, scalar_prefetch = 0 : i64, scratch_operands = 0 : i64, tpu.core_type = #tpu.core_type<tc>, window_params = [{transform_indices = @transform_0, window_bounds = array<i64: 16, 20>}, {pipeline_mode = #tpu.pipeline_mode<synchronous>, transform_indices = @transform_1, window_bounds = array<i64: 20, 256>}, {pipeline_mode = #tpu.pipeline_mode<synchronous>, transform_indices = @transform_2, window_bounds = array<i64: 1, 128>}, {pipeline_mode = #tpu.pipeline_mode<synchronous>, transform_indices = @transform_3, window_bounds = array<i64: 128, 128>}, {pipeline_mode = #tpu.pipeline_mode<synchronous>, transform_indices = @transform_4, window_bounds = array<i64: 1, 128>}, {pipeline_mode = #tpu.pipeline_mode<synchronous>, transform_indices = @transform_5, window_bounds = array<i64: 1, 128>}, {pipeline_mode = #tpu.pipeline_mode<synchronous>, transform_indices = @transform_6, window_bounds = array<i64: 1, 128>}, {pipeline_mode = #tpu.pipeline_mode<synchronous>, transform_indices = @transform_7, window_bounds = array<i64: 1, 2>}, {transform_indices = @transform_8, window_bounds = array<i64: 16, 2>}]} {
    %c0 = arith.constant 0 : index
    %c0_0 = arith.constant 0 : index
    %0 = vector.load %arg1[%c0, %c0_0] : memref<16x20xf32, #tpu.memory_space<vmem>>, vector<16x20xf32>
    %c0_1 = arith.constant 0 : index
    %c0_2 = arith.constant 0 : index
    %1 = vector.load %arg2[%c0_1, %c0_2] : memref<20x256xf32, #tpu.memory_space<vmem>>, vector<20x256xf32>
    %cst = arith.constant dense<0.000000e+00> : vector<16x256xf32>
    %2 = tpu.matmul %0, %1, %cst {dimension_numbers = #tpu.dot_dimension_numbers<[1], [0], [0], [1], [0, 0, 1, 1], [], []>} : vector<16x20xf32>, vector<20x256xf32>, vector<16x256xf32> -> vector<16x256xf32>
    %3 = vector.extract_strided_slice %2 {offsets = [0, 0], sizes = [16, 128], strides = [1, 1]} : vector<16x256xf32> to vector<16x128xf32>
    %c0_3 = arith.constant 0 : index
    %c0_4 = arith.constant 0 : index
    %4 = vector.load %arg3[%c0_3, %c0_4] : memref<1x128xf32, #tpu.memory_space<vmem>>, vector<1x128xf32>
    %5 = vector.broadcast %4 : vector<1x128xf32> to vector<16x128xf32>
    %6 = arith.addf %3, %5 : vector<16x128xf32>
    %cst_5 = arith.constant 0.000000e+00 : f32
    %7 = vector.broadcast %cst_5 : f32 to vector<16x128xf32>
    %8 = arith.maximumf %6, %7 : vector<16x128xf32>
    %9 = vector.extract_strided_slice %2 {offsets = [0, 128], sizes = [16, 128], strides = [1, 1]} : vector<16x256xf32> to vector<16x128xf32>
    %c0_6 = arith.constant 0 : index
    %c0_7 = arith.constant 0 : index
    %10 = vector.load %arg4[%c0_6, %c0_7] : memref<128x128xf32, #tpu.memory_space<vmem>>, vector<128x128xf32>
    %cst_8 = arith.constant dense<0.000000e+00> : vector<16x128xf32>
    %11 = tpu.matmul %8, %10, %cst_8 {dimension_numbers = #tpu.dot_dimension_numbers<[1], [0], [0], [1], [0, 0, 1, 1], [], []>} : vector<16x128xf32>, vector<128x128xf32>, vector<16x128xf32> -> vector<16x128xf32>
    %12 = arith.addf %11, %9 : vector<16x128xf32>
    %c0_9 = arith.constant 0 : index
    %c0_10 = arith.constant 0 : index
    %13 = vector.load %arg5[%c0_9, %c0_10] : memref<1x128xf32, #tpu.memory_space<vmem>>, vector<1x128xf32>
    %14 = vector.broadcast %13 : vector<1x128xf32> to vector<16x128xf32>
    %15 = arith.addf %12, %14 : vector<16x128xf32>
    %cst_11 = arith.constant 0.000000e+00 : f32
    %16 = vector.broadcast %cst_11 : f32 to vector<16x128xf32>
    %17 = arith.maximumf %15, %16 : vector<16x128xf32>
    %c0_12 = arith.constant 0 : index
    %c0_13 = arith.constant 0 : index
    %18 = vector.load %arg8[%c0_12, %c0_13] : memref<1x2xf32, #tpu.memory_space<vmem>>, vector<1x2xf32>
    %c0_14 = arith.constant 0 : index
    %c0_15 = arith.constant 0 : index
    %19 = vector.load %arg6[%c0_14, %c0_15] : memref<1x128xf32, #tpu.memory_space<vmem>>, vector<1x128xf32>
    %20 = vector.broadcast %19 : vector<1x128xf32> to vector<16x128xf32>
    %21 = arith.mulf %17, %20 : vector<16x128xf32>
    %cst_16 = arith.constant dense<0.000000e+00> : vector<16xf32>
    %22 = vector.multi_reduction <add>, %21, %cst_16 [1] : vector<16x128xf32> to vector<16xf32>
    %23 = vector.shape_cast %22 : vector<16xf32> to vector<16x1xf32>
    %24 = vector.extract_strided_slice %18 {offsets = [0, 0], sizes = [1, 1], strides = [1, 1]} : vector<1x2xf32> to vector<1x1xf32>
    %25 = vector.broadcast %24 : vector<1x1xf32> to vector<16x1xf32>
    %26 = arith.addf %23, %25 : vector<16x1xf32>
    %c0_17 = arith.constant 0 : index
    %c0_18 = arith.constant 0 : index
    %27 = vector.load %arg7[%c0_17, %c0_18] : memref<1x128xf32, #tpu.memory_space<vmem>>, vector<1x128xf32>
    %28 = vector.broadcast %27 : vector<1x128xf32> to vector<16x128xf32>
    %29 = arith.mulf %17, %28 : vector<16x128xf32>
    %cst_19 = arith.constant dense<0.000000e+00> : vector<16xf32>
    %30 = vector.multi_reduction <add>, %29, %cst_19 [1] : vector<16x128xf32> to vector<16xf32>
    %31 = vector.shape_cast %30 : vector<16xf32> to vector<16x1xf32>
    %32 = vector.extract_strided_slice %18 {offsets = [0, 1], sizes = [1, 1], strides = [1, 1]} : vector<1x2xf32> to vector<1x1xf32>
    %33 = vector.broadcast %32 : vector<1x1xf32> to vector<16x1xf32>
    %34 = arith.addf %31, %33 : vector<16x1xf32>
    %35 = math.exp %34 : vector<16x1xf32>
    %c0_20 = arith.constant 0 : index
    %c0_21 = arith.constant 0 : index
    %36 = vector.load %arg9[%c0_20, %c0_21] : memref<16x2xf32, #tpu.memory_space<vmem>>, vector<16x1xf32>
    tpu.vector_store %arg9[%c0_20, %c0_21], %26 {strides = array<i32>} : memref<16x2xf32, #tpu.memory_space<vmem>>, vector<16x1xf32>,
    %c0_22 = arith.constant 0 : index
    %c1 = arith.constant 1 : index
    %37 = vector.load %arg9[%c0_22, %c1] : memref<16x2xf32, #tpu.memory_space<vmem>>, vector<16x1xf32>
    tpu.vector_store %arg9[%c0_22, %c1], %35 {strides = array<i32>} : memref<16x2xf32, #tpu.memory_space<vmem>>, vector<16x1xf32>,
    return
  }
  func.func @transform_0(%arg0: i32) -> (i32, i32) {
    %c0_i32 = arith.constant 0 : i32
    %c0_i32_0 = arith.constant 0 : i32
    return %arg0, %c0_i32 : i32, i32
  }
  func.func @transform_1(%arg0: i32) -> (i32, i32) {
    %c0_i32 = arith.constant 0 : i32
    %c0_i32_0 = arith.constant 0 : i32
    %c0_i32_1 = arith.constant 0 : i32
    return %c0_i32, %c0_i32_0 : i32, i32
  }
  func.func @transform_2(%arg0: i32) -> (i32, i32) {
    %c0_i32 = arith.constant 0 : i32
    %c0_i32_0 = arith.constant 0 : i32
    %c0_i32_1 = arith.constant 0 : i32
    return %c0_i32, %c0_i32_0 : i32, i32
  }
  func.func @transform_3(%arg0: i32) -> (i32, i32) {
    %c0_i32 = arith.constant 0 : i32
    %c0_i32_0 = arith.constant 0 : i32
    %c0_i32_1 = arith.constant 0 : i32
    return %c0_i32, %c0_i32_0 : i32, i32
  }
  func.func @transform_4(%arg0: i32) -> (i32, i32) {
    %c0_i32 = arith.constant 0 : i32
    %c0_i32_0 = arith.constant 0 : i32
    %c0_i32_1 = arith.constant 0 : i32
    return %c0_i32, %c0_i32_0 : i32, i32
  }
  func.func @transform_5(%arg0: i32) -> (i32, i32) {
    %c0_i32 = arith.constant 0 : i32
    %c0_i32_0 = arith.constant 0 : i32
    %c0_i32_1 = arith.constant 0 : i32
    return %c0_i32, %c0_i32_0 : i32, i32
  }
  func.func @transform_6(%arg0: i32) -> (i32, i32) {
    %c0_i32 = arith.constant 0 : i32
    %c0_i32_0 = arith.constant 0 : i32
    %c0_i32_1 = arith.constant 0 : i32
    return %c0_i32, %c0_i32_0 : i32, i32
  }
  func.func @transform_7(%arg0: i32) -> (i32, i32) {
    %c0_i32 = arith.constant 0 : i32
    %c0_i32_0 = arith.constant 0 : i32
    %c0_i32_1 = arith.constant 0 : i32
    return %c0_i32, %c0_i32_0 : i32, i32
  }
  func.func @transform_8(%arg0: i32) -> (i32, i32) {
    %c0_i32 = arith.constant 0 : i32
    %c0_i32_0 = arith.constant 0 : i32
    return %arg0, %c0_i32 : i32, i32
  }
}

</mosaic_0001>

<bundles_post_ra>
// kernel: tpu_custom_call.1
= control target key start
LH: loop header
LB: loop body
LE: loop exit
PB: predicated region body
PF: predicated region fallthrough
CT: control target
= control target key end

     0   :  { %13 = vsyncpa [#allocation3], 0  ;;  %s451_s0 = inlined_call_operand.hbm [shape: f32[16,20], index: 0, kind: input, shape index: {}]   ;;  %s452_s1 = inlined_call_operand.hbm [shape: f32[20,256], index: 1, kind: input, shape index: {}]   ;;  %s453_s2 = inlined_call_operand.vmem [shape: f32[1,128], index: 2, kind: input, shape index: {}]   ;;  %s454_s3 = inlined_call_operand.hbm [shape: f32[128,128], index: 3, kind: input, shape index: {}]   ;;  %s455_s4 = inlined_call_operand.vmem [shape: f32[1,128], index: 4, kind: input, shape index: {}]   ;;  %s456_s5 = inlined_call_operand.vmem [shape: f32[1,128], index: 5, kind: input, shape index: {}]   ;;  %s457_s6 = inlined_call_operand.vmem [shape: f32[1,128], index: 6, kind: input, shape index: {}]   ;;  %s458_s7 = inlined_call_operand.vmem [shape: f32[1,2], index: 7, kind: input, shape index: {}]   ;;  %s459_s8 = inlined_call_operand.vmem [shape: f32[16,2], index: 8, kind: output, shape index: {}]  }
   0x1   :  { %14 = vsyncpa [#allocation5], 0  ;;  %s32_s29 = sshll.u32 %s452_s1, 4  ;;  %s357_s30 = smov [#allocation4]   ;;  %s33_s29 = int_to_ptr.hbm [resolvable:$true] %s32_s29 }
   0x2   :  { %s34_s9 = sshll.u32 %s357_s30, 4  ;;  %s19_s12 = sshll.u32 %s451_s0, 4  ;;  %s35_s9 = int_to_ptr.vmem [resolvable:$true] %s34_s9  ;;  %s20_s12 = int_to_ptr.hbm [resolvable:$true] %s19_s12 }
   0x3   :  { %s358_s13 = smov 256   ;;  %s359_s14 = smov 16  }
   0x4   :  { %40 = dma.hbm_to_vmem [thread:$0]  %s33_s29, 768, %s35_s9, [#allocation5], %s358_s13, %s358_s13, %s359_s14  }
   0x5   :  { %s360_s15 = smov [#allocation2]   ;;  %s361_s17 = smov 128  }
   0x6   :  { %s21_s16 = sshll.u32 %s360_s15, 4  ;;  %s362_s18 = smov 8   ;;  %s22_s16 = int_to_ptr.vmem [resolvable:$true] %s21_s16 }
   0x7   :  { %27 = dma.hbm_to_vmem [thread:$0]  %s20_s12, 256, %s22_s16, [#allocation3], %s361_s17, %s361_s17, %s362_s18  }
   0x8   :  { %s47_s20 = sshll.u32 %s454_s3, 4  ;;  %s363_s21 = smov [#allocation6]   ;;  %s48_s20 = int_to_ptr.hbm [resolvable:$true] %s47_s20 }
   0x9   :  { %s49_s22 = sshll.u32 %s363_s21, 4  ;;  %s50_s22 = int_to_ptr.vmem [resolvable:$true] %s49_s22 }
   0xa   :  { %55 = dma.hbm_to_vmem [thread:$0]  %s48_s20, 2048, %s50_s22, [#allocation5], %s361_s17, %s361_s17, %s362_s18  }
   0xb   :  { %353 = dma.done.wait [#allocation3], 256  }
   0xc   :  { %354 = vsyncadd [#allocation3], 4294967040 }
   0xd   :  { %355 = dma.done.wait [#allocation5], 2816  }
   0xe   :  { %356 = vsyncadd [#allocation5], 4294964480  ;;  %vm91_vm0 = vcmask 1043456   ;;  %v82_v0 = vld [vmem:[#allocation4 + $0x20] sm:$0xf]  ;;  %v80_v1 = vld [vmem:[#allocation4 + $0x10] sm:$0xff] }
   0xf   :  { %243 = vmatpush.msk.msra.mxu0 %vm91_vm0, %v82_v0  ;;  %v167_v2 = vld [vmem:[#allocation6 + $0x78] sm:$0xff]  ;;  %v78_v3 = vld [vmem:[#allocation4] sm:$0xff]  ;;  %v76_v5 = vld [vmem:[#allocation2] sm:$0xff]  ;;  %vm84_vm1 = vcmask 162816   ;;  %vm231_vm2 = vcmask 7168   ;;  %vm234_vm3 = vcmask 15368  }
  0x10   :  { %168 = vmatpush.msra.mxu2 %v167_v2  ;;  %v166_v4 = vld [vmem:[#allocation6 + $0x70] sm:$0xff]  ;;  %249 = vmatpush.msra.mxu3 %v167_v2  ;;  %v165_v6 = vld [vmem:[#allocation6 + $0x68] sm:$0xff]  ;;  %v164_v7 = vld [vmem:[#allocation6 + $0x60] sm:$0xff] }
  0x11   :  { %112 = vmatpush.msra.mxu0 %v80_v1  ;;  %v163_v8 = vld [vmem:[#allocation6 + $0x58] sm:$0xff]  ;;  %v162_v9 = vld [vmem:[#allocation6 + $0x50] sm:$0xff]  ;;  %v77_v10 = vld [vmem:[#allocation2 + $0x8] sm:$0xff] }
  0x12   :  { %169 = vmatpush.msra.mxu2 %v166_v4  ;;  %250 = vmatpush.msra.mxu3 %v166_v4  ;;  %v161_v11 = vld [vmem:[#allocation6 + $0x48] sm:$0xff]  ;;  %v160_v12 = vld [vmem:[#allocation6 + $0x40] sm:$0xff]  ;;  %v159_v13 = vld [vmem:[#allocation6 + $0x38] sm:$0xff] }
  0x13   :  { %113 = vmatpush.msra.mxu0 %v78_v3  ;;  %v158_v14 = vld [vmem:[#allocation6 + $0x30] sm:$0xff]  ;;  %v157_v15 = vld [vmem:[#allocation6 + $0x28] sm:$0xff]  ;;  %v156_v16 = vld [vmem:[#allocation6 + $0x20] sm:$0xff] }
  0x14   :  { %244 = vmatmul.msk.f32.vlgmr.msra.gmra.mxu0 %vm84_vm1, %v76_v5  ;;  %170 = vmatpush.msra.mxu2 %v165_v6  ;;  %v155_v17 = vld [vmem:[#allocation6 + $0x18] sm:$0xff]  ;;  %v154_v18 = vld [vmem:[#allocation6 + $0x10] sm:$0xff]  ;;  %v153_v19 = vld [vmem:[#allocation6 + $0x8] sm:$0xff] }
  0x15   :  { %251 = vmatpush.msra.mxu3 %v165_v6  ;;  %v152_v20 = vld [vmem:[#allocation6] sm:$0xff]  ;;  %v83_v21 = vld [vmem:[#allocation4 + $0x28] sm:$0xf]  ;;  %v81_v22 = vld [vmem:[#allocation4 + $0x18] sm:$0xff] }
  0x16   :  { %171 = vmatpush.msra.mxu2 %v164_v7  ;;  %246 = vmatpush.msk.msra.mxu1 %vm91_vm0, %v83_v21  ;;  %v79_v23 = vld [vmem:[#allocation4 + $0x8] sm:$0xff]  ;;  %v272_v24 = vld [vmem:[%s453_s2] ss:$0 sm:$0xff] }
  0x17   :  { %252 = vmatpush.msra.mxu3 %v164_v7  ;;  %v273_v32 = vld [vmem:[%s455_s4] ss:$0 sm:$0xff] }
  0x18   :  { %172 = vmatpush.msra.mxu2 %v163_v8  ;;  %135 = vmatpush.msra.mxu1 %v81_v22  ;;  %v274_v36 = vld [vmem:[%s457_s6] ss:$0 sm:$0xff] }
  0x19   :  { %253 = vmatpush.msra.mxu3 %v163_v8  ;;  %v275_v37 = vld [vmem:[%s456_s5] ss:$0 sm:$0xff] }
  0x1a   :  { %173 = vmatpush.msra.mxu2 %v162_v9  ;;  %136 = vmatpush.msra.mxu1 %v79_v23  ;;  %v276_v48 = vld [vmem:[%s458_s7] ss:$0 sm:$0xff] }
  0x1b   :  { %254 = vmatpush.msra.mxu3 %v162_v9  ;;  %247 = vmatmul.msk.f32.vlgmr.msra.gmra.mxu1 %vm84_vm1, %v76_v5 }
  0x1c   :  { %245 = vmatmul.msk.f32.gmra.mxu0 %vm84_vm1, %v77_v10  ;;  %174 = vmatpush.msra.mxu2 %v161_v11 }
  0x1d   :  { %255 = vmatpush.msra.mxu3 %v161_v11 }
  0x1e   :  { %175 = vmatpush.msra.mxu2 %v160_v12 }
  0x1f   :  { %256 = vmatpush.msra.mxu3 %v160_v12 }
  0x20   :  { %176 = vmatpush.msra.mxu2 %v159_v13 }
  0x21   :  { %257 = vmatpush.msra.mxu3 %v159_v13 }
  0x22   :  { %177 = vmatpush.msra.mxu2 %v158_v14 }
  0x23   :  { %258 = vmatpush.msra.mxu3 %v158_v14  ;;  %248 = vmatmul.msk.f32.gmra.mxu1 %vm84_vm1, %v77_v10 }
  0x24   :  { %178 = vmatpush.msra.mxu2 %v157_v15 }
  0x25   :  { %259 = vmatpush.msra.mxu3 %v157_v15 }
  0x26   :  { %179 = vmatpush.msra.mxu2 %v156_v16 }
  0x27   :  { %260 = vmatpush.msra.mxu3 %v156_v16 }
  0x28   :  { %180 = vmatpush.msra.mxu2 %v155_v17 }
  0x29   :  { %261 = vmatpush.msra.mxu3 %v155_v17 }
  0x2a   :  { %181 = vmatpush.msra.mxu2 %v154_v18 }
  0x2b   :  { %262 = vmatpush.msra.mxu3 %v154_v18 }
  0x2c   :  { %182 = vmatpush.msra.mxu2 %v153_v19 }
  0x2d   :  { %263 = vmatpush.msra.mxu3 %v153_v19 }
  0x2e   :  { %183 = vmatpush.msra.mxu2 %v152_v20 }
  0x2f   :  { %264 = vmatpush.msra.mxu3 %v152_v20 }
  0x91   :  { %v115_v25 = vpop.f32.mrf.mxu0 }
  0x92   :  { %v148_v26 = vadd.f32 %v272_v24, %v115_v25 }
  0x94   :  { %v150_v27 = vmax.f32 %v148_v26, 0.0 }
  0x96   :  { %184 = vmatmul.f32.vlgmr.msra.gmra.mxu2 %v150_v27 }
  0x98   :  { %v138_v31 = vpop.f32.mrf.mxu1 }
  0x99   :  { %v118_v28 = vpop.f32.mrf.mxu0 }
  0x9a   :  { %v149_v29 = vadd.f32 %v272_v24, %v118_v28 }
  0x9c   :  { %v151_v30 = vmax.f32 %v149_v29, 0.0 }
  0x9e   :  { %187 = vmatmul.f32.vlgmr.msra.gmra.mxu3 %v151_v30 }
  0xa0   :  { %v141_v39 = vpop.f32.mrf.mxu1 }
 0x119   :  { %v185_v33 = vpop.f32.mrf.mxu2 }
 0x11a   :  { %v186_v34 = vadd.f32 %v185_v33, %v138_v31 }
 0x11c   :  { %v195_v35 = vadd.f32 %v273_v32, %v186_v34 }
 0x11e   :  { %v197_v38 = vmax.f32 %v195_v35, 0.0 }
 0x120   :  { %v219_v40 = vmul.f32 %v274_v36, %v197_v38  ;;  %v204_v41 = vmul.f32 %v275_v37, %v197_v38 }
 0x121   :  { %v188_v42 = vpop.f32.mrf.mxu3 }
 0x122   :  { %v189_v43 = vadd.f32 %v188_v42, %v141_v39  ;;  %221 = vadd.xlane.f32.xlu0 %v219_v40  ;;  %206 = vadd.xlane.f32.xlu1 %v204_v41 }
 0x124   :  { %v196_v44 = vadd.f32 %v273_v32, %v189_v43 }
 0x126   :  { %v198_v45 = vmax.f32 %v196_v44, 0.0 }
 0x128   :  { %v220_v46 = vmul.f32 %v274_v36, %v198_v45  ;;  %v205_v47 = vmul.f32 %v275_v37, %v198_v45 }
 0x12a   :  { %223 = vadd.xlane.f32.xlu0 %v220_v46  ;;  %208 = vadd.xlane.f32.xlu1 %v205_v47 }
 0x195   :  { %v222_v49 = vpop.xlane.xlu0 %221  ;;  %v207_v50 = vpop.xlane.xlu1 %206 }
 0x196   :  { %v225_v51 = vadd.f32 %v276_v48, %v222_v49  ;;  %v213_v52 = vadd.f32 %v276_v48, %v207_v50 }
 0x198   :  { %v227_v53 = vmul.f32 1.442695, %v225_v51  ;;  %232 = vst.msk [vmem:[%s459_s8] sm:$0xff] %vm231_vm2, %v213_v52 }
 0x19a   :  { %277 = vpow2.f32 %v227_v53 }
 0x19d   :  { %v224_v54 = vpop.xlane.xlu0 %223  ;;  %v209_v55 = vpop.xlane.xlu1 %208 }
 0x19e   :  { %v226_v56 = vadd.f32 %v276_v48, %v224_v54  ;;  %v214_v57 = vadd.f32 %v276_v48, %v209_v55 }
 0x1a0   :  { %v278_v58 = vpop.eup %277  ;;  %v229_v59 = vmul.f32 1.442695, %v226_v56  ;;  %233 = vst.msk [vmem:[%s459_s8 + $0x8] sm:$0xff] %vm231_vm2, %v214_v57 }
 0x1a1   :  { %235 = vst.msk [vmem:[%s459_s8] sm:$0xff] %vm234_vm3, %v278_v58 }
 0x1a2   :  { %279 = vpow2.f32 %v229_v59 }
 0x1a8   :  { %v280_v60 = vpop.eup %279 }
 0x1a9   :  { %236 = vst.msk [vmem:[%s459_s8 + $0x8] sm:$0xff] %vm234_vm3, %v280_v60 }
 0x1aa   :  { %241 = vsyncpa [#allocation3], 1 }
 0x1ab   :  { %242 = vsyncpa [#allocation5], 1 }

</bundles_post_ra>
